<compile_context>
chip_gen: v6e
topology: v6e:2x2x1
jax: 0.10.0
libtpu: 0.0.40
codegen_flags: <defaults>
</compile_context>

<pallas_src>
import jax
import jax.numpy as jnp
from jax.experimental import pallas as pl
from jax.experimental.pallas import tpu as pltpu

# Small, module-consistent sizes
S = 8       # sequence length (tokens)
D = 32      # hidden size
H = 4       # attention heads
DH = D // H
F = 64      # FFN inner size
L = 3       # num labels (e.g. negative / neutral / positive)
V = 100     # vocab size (synthetic)

LANES = 128
NEG_INF = -1e30

# Packed parameter slab layout: one (SLAB_ROWS, 128) f32 operand.
ROW_W1 = 0            # rows [0, D),      cols [0, F) : FFN W1 (D, F)
ROW_W2 = D            # rows [D, D+F),    cols [0, D) : FFN W2 (F, D)
ROW_WC = D + F        # rows [.., ..+D),  cols [0, L) : classifier Wc, zero-padded to 128
ROW_VEC = D + F + D   # rows [.., ..+8)               : LN / bias vectors (8, 128)
SLAB_ROWS = ROW_VEC + 8                      # = 136 (multiple of 8)
R_LN1G, R_LN1B, R_B1, R_B2, R_LN2G, R_LN2B, R_BC = range(7)


def _layernorm(x, g, b, eps=1e-5):
    mu = jnp.mean(x, axis=-1, keepdims=True)
    var = jnp.mean((x - mu) ** 2, axis=-1, keepdims=True)
    return (x - mu) * jax.lax.rsqrt(var + eps) * g + b


def _gelu(x):
    # tanh approximation of GELU (EUP-friendly on TPU)
    # TODO(synk): PyTorch/HF nn.GELU uses the erf form; tanh approx kept here.
    return 0.5 * x * (1.0 + jnp.tanh(0.7978845608028654 * (x + 0.044715 * x * x * x)))


def encoder_classifier_kernel(ids_ref, emb_ref, wqkv_ref, wo_ref, slab_ref, out_ref):
    f32, bf16 = jnp.float32, jnp.bfloat16

    # ---- unpack the packed parameter slab (one DMA'd operand) --------------
    slab = slab_ref[...]                                   # (136, 128) f32
    w1 = slab[ROW_W1:ROW_W1 + D, 0:F].astype(bf16)         # (D, F)
    w2 = slab[ROW_W2:ROW_W2 + F, 0:D].astype(bf16)         # (F, D)
    wc = slab[ROW_WC:ROW_WC + D, :].astype(bf16)           # (D, 128) zero past L
    vec = slab[ROW_VEC:ROW_VEC + 8, :]                     # (8, 128) f32
    ln1g = vec[R_LN1G:R_LN1G + 1, 0:D]
    ln1b = vec[R_LN1B:R_LN1B + 1, 0:D]
    b1 = vec[R_B1:R_B1 + 1, 0:F]
    b2 = vec[R_B2:R_B2 + 1, 0:D]
    ln2g = vec[R_LN2G:R_LN2G + 1, 0:D]
    ln2b = vec[R_LN2B:R_LN2B + 1, 0:D]
    bc = vec[R_BC:R_BC + 1, :]                             # (1, 128), -1e30 past L

    # ---- in-kernel embedding lookup: one-hot matmul (no XLA gather) --------
    ids = ids_ref[...]                                     # (S, 1) int32
    iota_v = jax.lax.broadcasted_iota(jnp.int32, (S, V), 1)
    onehot = jnp.where(iota_v == ids, 1.0, 0.0).astype(bf16)        # (S, V)
    x = jnp.dot(onehot, emb_ref[...].astype(bf16),
                preferred_element_type=f32)                          # (S, D) f32

    # ---- batched multi-head self-attention (no per-head Python loop) -------
    xh = jnp.broadcast_to(x.astype(bf16), (H, S, D))       # (H, S, D) bf16
    wq = wqkv_ref[0].astype(bf16)                          # (H, DH, D)
    wk = wqkv_ref[1].astype(bf16)
    wv = wqkv_ref[2].astype(bf16)
    q = jnp.einsum('hsd,hed->hse', xh, wq, preferred_element_type=f32)  # (H, S, DH)
    k = jnp.einsum('hsd,hed->hse', xh, wk, preferred_element_type=f32)
    v = jnp.einsum('hsd,hed->hse', xh, wv, preferred_element_type=f32)

    scale = 1.0 / (DH ** 0.5)
    s = jnp.einsum('hqd,hkd->hqk', q.astype(bf16), k.astype(bf16),
                   preferred_element_type=f32) * scale              # (H, S, S)
    s = s - jnp.max(s, axis=-1, keepdims=True)
    p = jnp.exp(s)
    p = p * pl.reciprocal(jnp.sum(p, axis=-1, keepdims=True), approx=True)
    ctx = jnp.einsum('hqk,hkd->hqd', p.astype(bf16), v.astype(bf16),
                     preferred_element_type=f32)                    # (H, S, DH)
    attn = jnp.einsum('hqd,hde->hqe', ctx.astype(bf16),
                      wo_ref[...].astype(bf16),
                      preferred_element_type=f32)                   # (H, S, D)
    attn = jnp.sum(attn, axis=0)                                    # (S, D)

    # ---- residual + LN + FFN + LN (f32 elementwise, bf16 MXU operands) -----
    h1 = _layernorm(x + attn, ln1g, ln1b)
    ff = _gelu(jnp.dot(h1.astype(bf16), w1, preferred_element_type=f32) + b1)
    ff = jnp.dot(ff.astype(bf16), w2, preferred_element_type=f32) + b2
    h2 = _layernorm(h1 + ff, ln2g, ln2b)

    # ---- CLS pooling + classifier + softmax (lane-dense 128-wide output) ---
    cls = h2[0:1, :]                                                # (1, D)
    logits = jnp.dot(cls.astype(bf16), wc, preferred_element_type=f32) + bc  # (1, 128)
    logits = logits - jnp.max(logits, axis=-1, keepdims=True)
    e = jnp.exp(logits)
    out_ref[...] = e * pl.reciprocal(jnp.sum(e, axis=-1, keepdims=True), approx=True)


def make_params(key):
    keys = jax.random.split(key, 8)
    init = lambda k, shape, s: (s * jax.random.normal(k, shape)).astype(jnp.float32)
    return dict(
        emb=init(keys[0], (V, D), 0.02),
        wq=init(keys[1], (D, D), 0.05),
        wk=init(keys[2], (D, D), 0.05),
        wv=init(keys[3], (D, D), 0.05),
        wo=init(keys[4], (D, D), 0.05),
        ln1g=jnp.ones((D,), jnp.float32),
        ln1b=jnp.zeros((D,), jnp.float32),
        w1=init(keys[5], (D, F), 0.05),
        b1=jnp.zeros((F,), jnp.float32),
        w2=init(keys[6], (F, D), 0.05),
        b2=jnp.zeros((D,), jnp.float32),
        ln2g=jnp.ones((D,), jnp.float32),
        ln2b=jnp.zeros((D,), jnp.float32),
        wc=init(keys[7], (D, L), 0.05),
        bc=jnp.zeros((L,), jnp.float32),
    )


def pack_params(p):
    # Head-shaped attention weights: [h, e, d] = W[d, h*DH + e]  (minor dim = D)
    to_heads_out = lambda w: w.T.reshape(H, DH, D)
    w_qkv = jnp.stack([to_heads_out(p["wq"]),
                       to_heads_out(p["wk"]),
                       to_heads_out(p["wv"])], axis=0)      # (3, H, DH, D)
    w_o = p["wo"].reshape(H, DH, D)                         # (H, DH, D)

    slab = jnp.zeros((SLAB_ROWS, LANES), jnp.float32)
    slab = slab.at[ROW_W1:ROW_W1 + D, 0:F].set(p["w1"])
    slab = slab.at[ROW_W2:ROW_W2 + F, 0:D].set(p["w2"])
    slab = slab.at[ROW_WC:ROW_WC + D, 0:L].set(p["wc"])

    vec = jnp.zeros((8, LANES), jnp.float32)
    vec = vec.at[R_LN1G, 0:D].set(p["ln1g"])
    vec = vec.at[R_LN1B, 0:D].set(p["ln1b"])
    vec = vec.at[R_B1, 0:F].set(p["b1"])
    vec = vec.at[R_B2, 0:D].set(p["b2"])
    vec = vec.at[R_LN2G, 0:D].set(p["ln2g"])
    vec = vec.at[R_LN2B, 0:D].set(p["ln2b"])
    vec = vec.at[R_BC, :].set(jnp.full((LANES,), NEG_INF, jnp.float32))
    vec = vec.at[R_BC, 0:L].set(p["bc"])
    slab = slab.at[ROW_VEC:ROW_VEC + 8, :].set(vec)

    return p["emb"], w_qkv, w_o, slab


@jax.jit
def classify(token_ids, emb, w_qkv, w_o, slab):
    ids2d = token_ids.astype(jnp.int32).reshape(S, 1)
    vmem = lambda: pl.BlockSpec(memory_space=pltpu.MemorySpace.VMEM)
    probs_pad = pl.pallas_call(
        encoder_classifier_kernel,
        out_shape=jax.ShapeDtypeStruct((1, LANES), jnp.float32),
        in_specs=[vmem() for _ in range(5)],
        out_specs=vmem(),
    )(ids2d, emb, w_qkv, w_o, slab)
    return probs_pad[0, :L]                                  # (L,) like output[0][0]


def classify_ref(token_ids, p):
    # pure-JAX reference mirroring the kernel's bf16-operand / f32-accumulate math
    f32, bf16 = jnp.float32, jnp.bfloat16
    x = p["emb"].astype(bf16).astype(f32)[token_ids]                     # (S, D)
    to_heads_out = lambda w: w.T.reshape(H, DH, D)
    wq, wk, wv = (to_heads_out(p[n]).astype(bf16) for n in ("wq", "wk", "wv"))
    xh = jnp.broadcast_to(x.astype(bf16), (H, S, D))
    q = jnp.einsum('hsd,hed->hse', xh, wq, preferred_element_type=f32)
    k = jnp.einsum('hsd,hed->hse', xh, wk, preferred_element_type=f32)
    v = jnp.einsum('hsd,hed->hse', xh, wv, preferred_element_type=f32)
    s = jnp.einsum('hqd,hkd->hqk', q.astype(bf16), k.astype(bf16),
                   preferred_element_type=f32) * (1.0 / (DH ** 0.5))
    pa = jax.nn.softmax(s, axis=-1)
    ctx = jnp.einsum('hqk,hkd->hqd', pa.astype(bf16), v.astype(bf16),
                     preferred_element_type=f32)
    attn = jnp.einsum('hqd,hde->hqe', ctx.astype(bf16),
                      p["wo"].reshape(H, DH, D).astype(bf16),
                      preferred_element_type=f32).sum(axis=0)
    h1 = _layernorm(x + attn, p["ln1g"], p["ln1b"])
    ff = _gelu(jnp.dot(h1.astype(bf16), p["w1"].astype(bf16),
                       preferred_element_type=f32) + p["b1"])
    ff = jnp.dot(ff.astype(bf16), p["w2"].astype(bf16),
                 preferred_element_type=f32) + p["b2"]
    h2 = _layernorm(h1 + ff, p["ln2g"], p["ln2b"])
    logits = jnp.dot(h2[0:1, :].astype(bf16), p["wc"].astype(bf16),
                     preferred_element_type=f32) + p["bc"]
    return jax.nn.softmax(logits, axis=-1)[0]


if __name__ == "__main__":
    key = jax.random.PRNGKey(0)
    pkey, tkey = jax.random.split(key)
    params = make_params(pkey)
    token_ids = jax.random.randint(tkey, (S,), 0, V, dtype=jnp.int32)

    emb, w_qkv, w_o, slab = pack_params(params)
    probs = classify(token_ids, emb, w_qkv, w_o, slab)
    probs = jax.block_until_ready(probs)

    ref = classify_ref(token_ids, params)
    assert probs.shape == (L,)
    assert bool(jnp.all(jnp.isfinite(probs)))
    assert jnp.allclose(jnp.sum(probs), 1.0, atol=1e-2)
    # approx reciprocal + bf16 MXU operands -> loosened tolerance vs reference
    assert jnp.allclose(probs, ref, atol=5e-3, rtol=5e-2)
    # TODO(synk): HF tokenizer / checkpoint loading, wall-clock timing, and the
    # label-ranking dict in predict() have no Pallas equivalent (host-side glue).
    print("KERNEL_OK")
</pallas_src>

<mosaic_0001>
module attributes {stable_mosaic.version = 11 : i64} {
  func.func @encoder_classifier_kernel(%arg0: memref<8x1xi32, #tpu.memory_space<vmem>>, %arg1: memref<100x32xf32, #tpu.memory_space<vmem>>, %arg2: memref<3x4x8x32xf32, #tpu.memory_space<vmem>>, %arg3: memref<4x8x32xf32, #tpu.memory_space<vmem>>, %arg4: memref<136x128xf32, #tpu.memory_space<vmem>>, %arg5: memref<1x128xf32, #tpu.memory_space<vmem>>) attributes {dimension_semantics = [], scalar_prefetch = 0 : i64, scratch_operands = 0 : i64, tpu.core_type = #tpu.core_type<tc>} {
    %c0 = arith.constant 0 : index
    %c0_0 = arith.constant 0 : index
    %0 = vector.load %arg4[%c0, %c0_0] : memref<136x128xf32, #tpu.memory_space<vmem>>, vector<136x128xf32>
    %1 = vector.extract_strided_slice %0 {offsets = [0, 0], sizes = [32, 64], strides = [1, 1]} : vector<136x128xf32> to vector<32x64xf32>
    %2 = arith.truncf %1 : vector<32x64xf32> to vector<32x64xbf16>
    %3 = vector.extract_strided_slice %0 {offsets = [32, 0], sizes = [64, 32], strides = [1, 1]} : vector<136x128xf32> to vector<64x32xf32>
    %4 = arith.truncf %3 : vector<64x32xf32> to vector<64x32xbf16>
    %5 = vector.extract_strided_slice %0 {offsets = [96, 0], sizes = [32, 128], strides = [1, 1]} : vector<136x128xf32> to vector<32x128xf32>
    %6 = arith.truncf %5 : vector<32x128xf32> to vector<32x128xbf16>
    %7 = vector.extract_strided_slice %0 {offsets = [128, 0], sizes = [8, 128], strides = [1, 1]} : vector<136x128xf32> to vector<8x128xf32>
    %8 = vector.extract_strided_slice %7 {offsets = [0, 0], sizes = [1, 32], strides = [1, 1]} : vector<8x128xf32> to vector<1x32xf32>
    %9 = vector.extract_strided_slice %7 {offsets = [1, 0], sizes = [1, 32], strides = [1, 1]} : vector<8x128xf32> to vector<1x32xf32>
    %10 = vector.extract_strided_slice %7 {offsets = [2, 0], sizes = [1, 64], strides = [1, 1]} : vector<8x128xf32> to vector<1x64xf32>
    %11 = vector.extract_strided_slice %7 {offsets = [3, 0], sizes = [1, 32], strides = [1, 1]} : vector<8x128xf32> to vector<1x32xf32>
    %12 = vector.extract_strided_slice %7 {offsets = [4, 0], sizes = [1, 32], strides = [1, 1]} : vector<8x128xf32> to vector<1x32xf32>
    %13 = vector.extract_strided_slice %7 {offsets = [5, 0], sizes = [1, 32], strides = [1, 1]} : vector<8x128xf32> to vector<1x32xf32>
    %14 = vector.extract_strided_slice %7 {offsets = [6, 0], sizes = [1, 128], strides = [1, 1]} : vector<8x128xf32> to vector<1x128xf32>
    %c0_1 = arith.constant 0 : index
    %c0_2 = arith.constant 0 : index
    %15 = vector.load %arg0[%c0_1, %c0_2] : memref<8x1xi32, #tpu.memory_space<vmem>>, vector<8x1xi32>
    %16 = tpu.iota {dimensions = array<i32: 1>} : vector<8x100xi32>
    %17 = vector.broadcast %15 : vector<8x1xi32> to vector<8x100xi32>
    %18 = arith.cmpi eq, %16, %17 : vector<8x100xi32>
    %cst = arith.constant 1.000000e+00 : f32
    %cst_3 = arith.constant 0.000000e+00 : f32
    %19 = vector.broadcast %cst : f32 to vector<8x100xf32>
    %20 = vector.broadcast %cst_3 : f32 to vector<8x100xf32>
    %21 = arith.select %18, %19, %20 : vector<8x100xi1>, vector<8x100xf32>
    %22 = arith.truncf %21 : vector<8x100xf32> to vector<8x100xbf16>
    %c0_4 = arith.constant 0 : index
    %c0_5 = arith.constant 0 : index
    %23 = vector.load %arg1[%c0_4, %c0_5] : memref<100x32xf32, #tpu.memory_space<vmem>>, vector<100x32xf32>
    %24 = arith.truncf %23 : vector<100x32xf32> to vector<100x32xbf16>
    %cst_6 = arith.constant dense<0.000000e+00> : vector<8x32xf32>
    %25 = tpu.matmul %22, %24, %cst_6 {dimension_numbers = #tpu.dot_dimension_numbers<[1], [0], [0], [1], [0, 0, 1, 1], [], []>} : vector<8x100xbf16>, vector<100x32xbf16>, vector<8x32xf32> -> vector<8x32xf32>
    %26 = arith.truncf %25 : vector<8x32xf32> to vector<8x32xbf16>
    %27 = vector.shape_cast %26 : vector<8x32xbf16> to vector<1x8x32xbf16>
    %28 = vector.broadcast %27 : vector<1x8x32xbf16> to vector<4x8x32xbf16>
    %c0_7 = arith.constant 0 : index
    %c0_8 = arith.constant 0 : index
    %c0_9 = arith.constant 0 : index
    %c0_10 = arith.constant 0 : index
    %29 = vector.load %arg2[%c0_7, %c0_8, %c0_9, %c0_10] : memref<3x4x8x32xf32, #tpu.memory_space<vmem>>, vector<1x4x8x32xf32>
    %30 = vector.shape_cast %29 : vector<1x4x8x32xf32> to vector<4x8x32xf32>
    %31 = arith.truncf %30 : vector<4x8x32xf32> to vector<4x8x32xbf16>
    %c1 = arith.constant 1 : index
    %c0_11 = arith.constant 0 : index
    %c0_12 = arith.constant 0 : index
    %c0_13 = arith.constant 0 : index
    %32 = vector.load %arg2[%c1, %c0_11, %c0_12, %c0_13] : memref<3x4x8x32xf32, #tpu.memory_space<vmem>>, vector<1x4x8x32xf32>
    %33 = vector.shape_cast %32 : vector<1x4x8x32xf32> to vector<4x8x32xf32>
    %34 = arith.truncf %33 : vector<4x8x32xf32> to vector<4x8x32xbf16>
    %c2 = arith.constant 2 : index
    %c0_14 = arith.constant 0 : index
    %c0_15 = arith.constant 0 : index
    %c0_16 = arith.constant 0 : index
    %35 = vector.load %arg2[%c2, %c0_14, %c0_15, %c0_16] : memref<3x4x8x32xf32, #tpu.memory_space<vmem>>, vector<1x4x8x32xf32>
    %36 = vector.shape_cast %35 : vector<1x4x8x32xf32> to vector<4x8x32xf32>
    %37 = arith.truncf %36 : vector<4x8x32xf32> to vector<4x8x32xbf16>
    "tpu.trace_start"() <{level = 10 : i32, message = "hsd,hed->hse"}> : () -> ()
    %cst_17 = arith.constant dense<0.000000e+00> : vector<4x8x8xf32>
    %38 = tpu.matmul %28, %31, %cst_17 {dimension_numbers = #tpu.dot_dimension_numbers<[2], [2], [1], [1], [0, 0, 0, 1, 1, 1], [0], [0]>} : vector<4x8x32xbf16>, vector<4x8x32xbf16>, vector<4x8x8xf32> -> vector<4x8x8xf32>
    %cst_18 = arith.constant dense<0.000000e+00> : vector<4x8x8xf32>
    %39 = tpu.matmul %28, %34, %cst_18 {dimension_numbers = #tpu.dot_dimension_numbers<[2], [2], [1], [1], [0, 0, 0, 1, 1, 1], [0], [0]>} : vector<4x8x32xbf16>, vector<4x8x32xbf16>, vector<4x8x8xf32> -> vector<4x8x8xf32>
    %cst_19 = arith.constant dense<0.000000e+00> : vector<4x8x8xf32>
    %40 = tpu.matmul %28, %37, %cst_19 {dimension_numbers = #tpu.dot_dimension_numbers<[2], [2], [1], [1], [0, 0, 0, 1, 1, 1], [0], [0]>} : vector<4x8x32xbf16>, vector<4x8x32xbf16>, vector<4x8x8xf32> -> vector<4x8x8xf32>
    "tpu.trace_stop"() : () -> ()
    %41 = arith.truncf %38 : vector<4x8x8xf32> to vector<4x8x8xbf16>
    %42 = arith.truncf %39 : vector<4x8x8xf32> to vector<4x8x8xbf16>
    "tpu.trace_start"() <{level = 10 : i32, message = "hqd,hkd->hqk"}> : () -> ()
    %cst_20 = arith.constant dense<0.000000e+00> : vector<4x8x8xf32>
    %43 = tpu.matmul %41, %42, %cst_20 {dimension_numbers = #tpu.dot_dimension_numbers<[2], [2], [1], [1], [0, 0, 0, 1, 1, 1], [0], [0]>} : vector<4x8x8xbf16>, vector<4x8x8xbf16>, vector<4x8x8xf32> -> vector<4x8x8xf32>
    "tpu.trace_stop"() : () -> ()
    %cst_21 = arith.constant 0.353553385 : f32
    %44 = vector.broadcast %cst_21 : f32 to vector<4x8x8xf32>
    %45 = arith.mulf %43, %44 : vector<4x8x8xf32>
    %cst_22 = arith.constant dense<0xFF800000> : vector<4x8xf32>
    %46 = vector.multi_reduction <maximumf>, %45, %cst_22 [2] : vector<4x8x8xf32> to vector<4x8xf32>
    %47 = vector.shape_cast %46 : vector<4x8xf32> to vector<4x8x1xf32>
    %48 = vector.broadcast %47 : vector<4x8x1xf32> to vector<4x8x8xf32>
    %49 = arith.subf %45, %48 : vector<4x8x8xf32>
    %50 = math.exp %49 : vector<4x8x8xf32>
    %cst_23 = arith.constant dense<0.000000e+00> : vector<4x8xf32>
    %51 = vector.multi_reduction <add>, %50, %cst_23 [2] : vector<4x8x8xf32> to vector<4x8xf32>
    %52 = vector.shape_cast %51 : vector<4x8xf32> to vector<4x8x1xf32>
    %53 = tpu.reciprocal %52 {approx = true} : vector<4x8x1xf32> -> vector<4x8x1xf32>
    %54 = vector.broadcast %53 : vector<4x8x1xf32> to vector<4x8x8xf32>
    %55 = arith.mulf %50, %54 : vector<4x8x8xf32>
    %56 = arith.truncf %55 : vector<4x8x8xf32> to vector<4x8x8xbf16>
    %57 = arith.truncf %40 : vector<4x8x8xf32> to vector<4x8x8xbf16>
    "tpu.trace_start"() <{level = 10 : i32, message = "hqk,hkd->hqd"}> : () -> ()
    %cst_24 = arith.constant dense<0.000000e+00> : vector<4x8x8xf32>
    %58 = tpu.matmul %56, %57, %cst_24 {dimension_numbers = #tpu.dot_dimension_numbers<[2], [1], [1], [2], [0, 0, 0, 1, 1, 2], [0], [0]>} : vector<4x8x8xbf16>, vector<4x8x8xbf16>, vector<4x8x8xf32> -> vector<4x8x8xf32>
    "tpu.trace_stop"() : () -> ()
    %59 = arith.truncf %58 : vector<4x8x8xf32> to vector<4x8x8xbf16>
    %c0_25 = arith.constant 0 : index
    %c0_26 = arith.constant 0 : index
    %c0_27 = arith.constant 0 : index
    %60 = vector.load %arg3[%c0_25, %c0_26, %c0_27] : memref<4x8x32xf32, #tpu.memory_space<vmem>>, vector<4x8x32xf32>
    %61 = arith.truncf %60 : vector<4x8x32xf32> to vector<4x8x32xbf16>
    "tpu.trace_start"() <{level = 10 : i32, message = "hqd,hde->hqe"}> : () -> ()
    %cst_28 = arith.constant dense<0.000000e+00> : vector<4x8x32xf32>
    %62 = tpu.matmul %59, %61, %cst_28 {dimension_numbers = #tpu.dot_dimension_numbers<[2], [1], [1], [2], [0, 0, 0, 1, 1, 2], [0], [0]>} : vector<4x8x8xbf16>, vector<4x8x32xbf16>, vector<4x8x32xf32> -> vector<4x8x32xf32>
    "tpu.trace_stop"() : () -> ()
    %cst_29 = arith.constant dense<0.000000e+00> : vector<8x32xf32>
    %63 = vector.multi_reduction <add>, %62, %cst_29 [0] : vector<4x8x32xf32> to vector<8x32xf32>
    %64 = arith.addf %25, %63 : vector<8x32xf32>
    %cst_30 = arith.constant dense<0.000000e+00> : vector<8xf32>
    %65 = vector.multi_reduction <add>, %64, %cst_30 [1] : vector<8x32xf32> to vector<8xf32>
    %66 = vector.shape_cast %65 : vector<8xf32> to vector<8x1xf32>
    %cst_31 = arith.constant 3.200000e+01 : f32
    %67 = vector.broadcast %cst_31 : f32 to vector<8x1xf32>
    %68 = arith.divf %66, %67 : vector<8x1xf32>
    %69 = vector.broadcast %68 : vector<8x1xf32> to vector<8x32xf32>
    %70 = arith.subf %64, %69 : vector<8x32xf32>
    %71 = arith.mulf %70, %70 : vector<8x32xf32>
    %cst_32 = arith.constant dense<0.000000e+00> : vector<8xf32>
    %72 = vector.multi_reduction <add>, %71, %cst_32 [1] : vector<8x32xf32> to vector<8xf32>
    %73 = vector.shape_cast %72 : vector<8xf32> to vector<8x1xf32>
    %cst_33 = arith.constant 3.200000e+01 : f32
    %74 = vector.broadcast %cst_33 : f32 to vector<8x1xf32>
    %75 = arith.divf %73, %74 : vector<8x1xf32>
    %76 = vector.broadcast %68 : vector<8x1xf32> to vector<8x32xf32>
    %77 = arith.subf %64, %76 : vector<8x32xf32>
    %cst_34 = arith.constant 9.99999974E-6 : f32
    %78 = vector.broadcast %cst_34 : f32 to vector<8x1xf32>
    %79 = arith.addf %75, %78 : vector<8x1xf32>
    %80 = math.rsqrt %79 : vector<8x1xf32>
    %81 = vector.broadcast %80 : vector<8x1xf32> to vector<8x32xf32>
    %82 = arith.mulf %77, %81 : vector<8x32xf32>
    %83 = vector.broadcast %8 : vector<1x32xf32> to vector<8x32xf32>
    %84 = arith.mulf %82, %83 : vector<8x32xf32>
    %85 = vector.broadcast %9 : vector<1x32xf32> to vector<8x32xf32>
    %86 = arith.addf %84, %85 : vector<8x32xf32>
    %87 = arith.truncf %86 : vector<8x32xf32> to vector<8x32xbf16>
    %cst_35 = arith.constant dense<0.000000e+00> : vector<8x64xf32>
    %88 = tpu.matmul %87, %2, %cst_35 {dimension_numbers = #tpu.dot_dimension_numbers<[1], [0], [0], [1], [0, 0, 1, 1], [], []>} : vector<8x32xbf16>, vector<32x64xbf16>, vector<8x64xf32> -> vector<8x64xf32>
    %89 = vector.broadcast %10 : vector<1x64xf32> to vector<8x64xf32>
    %90 = arith.addf %88, %89 : vector<8x64xf32>
    %cst_36 = arith.constant 5.000000e-01 : f32
    %91 = vector.broadcast %cst_36 : f32 to vector<8x64xf32>
    %92 = arith.mulf %91, %90 : vector<8x64xf32>
    %cst_37 = arith.constant 4.471500e-02 : f32
    %93 = vector.broadcast %cst_37 : f32 to vector<8x64xf32>
    %94 = arith.mulf %93, %90 : vector<8x64xf32>
    %95 = arith.mulf %94, %90 : vector<8x64xf32>
    %96 = arith.mulf %95, %90 : vector<8x64xf32>
    %97 = arith.addf %90, %96 : vector<8x64xf32>
    %cst_38 = arith.constant 0.797884583 : f32
    %98 = vector.broadcast %cst_38 : f32 to vector<8x64xf32>
    %99 = arith.mulf %98, %97 : vector<8x64xf32>
    %100 = math.tanh %99 : vector<8x64xf32>
    %cst_39 = arith.constant 1.000000e+00 : f32
    %101 = vector.broadcast %cst_39 : f32 to vector<8x64xf32>
    %102 = arith.addf %101, %100 : vector<8x64xf32>
    %103 = arith.mulf %92, %102 : vector<8x64xf32>
    %104 = arith.truncf %103 : vector<8x64xf32> to vector<8x64xbf16>
    %cst_40 = arith.constant dense<0.000000e+00> : vector<8x32xf32>
    %105 = tpu.matmul %104, %4, %cst_40 {dimension_numbers = #tpu.dot_dimension_numbers<[1], [0], [0], [1], [0, 0, 1, 1], [], []>} : vector<8x64xbf16>, vector<64x32xbf16>, vector<8x32xf32> -> vector<8x32xf32>
    %106 = vector.broadcast %11 : vector<1x32xf32> to vector<8x32xf32>
    %107 = arith.addf %105, %106 : vector<8x32xf32>
    %108 = arith.addf %86, %107 : vector<8x32xf32>
    %cst_41 = arith.constant dense<0.000000e+00> : vector<8xf32>
    %109 = vector.multi_reduction <add>, %108, %cst_41 [1] : vector<8x32xf32> to vector<8xf32>
    %110 = vector.shape_cast %109 : vector<8xf32> to vector<8x1xf32>
    %cst_42 = arith.constant 3.200000e+01 : f32
    %111 = vector.broadcast %cst_42 : f32 to vector<8x1xf32>
    %112 = arith.divf %110, %111 : vector<8x1xf32>
    %113 = vector.broadcast %112 : vector<8x1xf32> to vector<8x32xf32>
    %114 = arith.subf %108, %113 : vector<8x32xf32>
    %115 = arith.mulf %114, %114 : vector<8x32xf32>
    %cst_43 = arith.constant dense<0.000000e+00> : vector<8xf32>
    %116 = vector.multi_reduction <add>, %115, %cst_43 [1] : vector<8x32xf32> to vector<8xf32>
    %117 = vector.shape_cast %116 : vector<8xf32> to vector<8x1xf32>
    %cst_44 = arith.constant 3.200000e+01 : f32
    %118 = vector.broadcast %cst_44 : f32 to vector<8x1xf32>
    %119 = arith.divf %117, %118 : vector<8x1xf32>
    %120 = vector.broadcast %112 : vector<8x1xf32> to vector<8x32xf32>
    %121 = arith.subf %108, %120 : vector<8x32xf32>
    %cst_45 = arith.constant 9.99999974E-6 : f32
    %122 = vector.broadcast %cst_45 : f32 to vector<8x1xf32>
    %123 = arith.addf %119, %122 : vector<8x1xf32>
    %124 = math.rsqrt %123 : vector<8x1xf32>
    %125 = vector.broadcast %124 : vector<8x1xf32> to vector<8x32xf32>
    %126 = arith.mulf %121, %125 : vector<8x32xf32>
    %127 = vector.broadcast %12 : vector<1x32xf32> to vector<8x32xf32>
    %128 = arith.mulf %126, %127 : vector<8x32xf32>
    %129 = vector.broadcast %13 : vector<1x32xf32> to vector<8x32xf32>
    %130 = arith.addf %128, %129 : vector<8x32xf32>
    %131 = vector.extract_strided_slice %130 {offsets = [0, 0], sizes = [1, 32], strides = [1, 1]} : vector<8x32xf32> to vector<1x32xf32>
    %132 = arith.truncf %131 : vector<1x32xf32> to vector<1x32xbf16>
    %cst_46 = arith.constant dense<0.000000e+00> : vector<1x128xf32>
    %133 = tpu.matmul %132, %6, %cst_46 {dimension_numbers = #tpu.dot_dimension_numbers<[1], [0], [0], [1], [0, 0, 1, 1], [], []>} : vector<1x32xbf16>, vector<32x128xbf16>, vector<1x128xf32> -> vector<1x128xf32>
    %134 = arith.addf %133, %14 : vector<1x128xf32>
    %cst_47 = arith.constant dense<0xFF800000> : vector<1xf32>
    %135 = vector.multi_reduction <maximumf>, %134, %cst_47 [1] : vector<1x128xf32> to vector<1xf32>
    %136 = vector.shape_cast %135 : vector<1xf32> to vector<1x1xf32>
    %137 = vector.broadcast %136 : vector<1x1xf32> to vector<1x128xf32>
    %138 = arith.subf %134, %137 : vector<1x128xf32>
    %139 = math.exp %138 : vector<1x128xf32>
    %cst_48 = arith.constant dense<0.000000e+00> : vector<1xf32>
    %140 = vector.multi_reduction <add>, %139, %cst_48 [1] : vector<1x128xf32> to vector<1xf32>
    %141 = vector.shape_cast %140 : vector<1xf32> to vector<1x1xf32>
    %142 = tpu.reciprocal %141 {approx = true} : vector<1x1xf32> -> vector<1x1xf32>
    %143 = vector.broadcast %142 : vector<1x1xf32> to vector<1x128xf32>
    %144 = arith.mulf %139, %143 : vector<1x128xf32>
    %c0_49 = arith.constant 0 : index
    %c0_50 = arith.constant 0 : index
    %145 = vector.load %arg5[%c0_49, %c0_50] : memref<1x128xf32, #tpu.memory_space<vmem>>, vector<1x128xf32>
    tpu.vector_store %arg5[%c0_49, %c0_50], %144 {strides = array<i32>} : memref<1x128xf32, #tpu.memory_space<vmem>>, vector<1x128xf32>,
    return
  }
}

</mosaic_0001>

<bundles_post_ra>
// kernel: classify.1
= control target key start
LH: loop header
LB: loop body
LE: loop exit
PB: predicated region body
PF: predicated region fallthrough
CT: control target
= control target key end

     0   :  { %10 = vsyncpa [#allocation3], 0  ;;  %s2266_s0 = inlined_call_operand.vmem [shape: s32[8,1], index: 0, kind: input, shape index: {}]   ;;  %s2267_s1 = inlined_call_operand.vmem [shape: f32[100,32], index: 1, kind: input, shape index: {}]   ;;  %s2268_s2 = inlined_call_operand.hbm [shape: f32[3,4,8,32], index: 2, kind: input, shape index: {}]   ;;  %s2269_s3 = inlined_call_operand.hbm [shape: f32[4,8,32], index: 3, kind: input, shape index: {}]   ;;  %s2270_s4 = inlined_call_operand.vmem [shape: f32[136,128], index: 4, kind: input, shape index: {}]   ;;  %s2271_s5 = inlined_call_operand.vmem [shape: f32[1,128], index: 5, kind: output, shape index: {}]  }
   0x1   :  { %11 = vsyncpa [#allocation5], 0  ;;  %s1919_s18 = smov [#allocation2]  }
   0x2   :  { %s21_s19 = sshll.u32 %s1919_s18, 4  ;;  %s22_s19 = int_to_ptr.vmem [resolvable:$true] %s21_s19 }
   0x3   :  { %s1883_s20 = scalar_lea.vmem %s22_s19, 1536  ;;  %p1888_p1 = scmp.lt.s32.totalorder %s22_s19, %s22_s19 }
   0x4   :  { %p1884_p0 = scmp.ne.s32.totalorder %s22_s19, %s1883_s20  ;;  %p1889_p2 = scmp.lt.s32.totalorder %s1883_s20, %s1883_s20 }
   0x6   :  { %p1890_p3 = por %p1889_p2, %p1888_p1 }
   0x8   :  { %p1891_p4 = pnand %p1890_p3, %p1884_p0 }
   0xa   :  { %1894 = shalt.err (!%p1891_p4)
}
   0xb   :  { %s1920_s21 = smov 128   ;;  %s1921_s22 = smov 8  }
   0xc   :  { %27 = dma.hbm_to_vmem [thread:$0]  %s2268_s2, 1536, %s22_s19, [#allocation3], %s1920_s21, %s1920_s21, %s1921_s22  }
   0xd   :  { %s1922_s25 = smov [#allocation4]  }
   0xe   :  { %s33_s26 = sshll.u32 %s1922_s25, 4  ;;  %s34_s26 = int_to_ptr.vmem [resolvable:$true] %s33_s26 }
   0xf   :  { %s1903_s27 = scalar_lea.vmem %s34_s26, 512  ;;  %p1908_p6 = scmp.lt.s32.totalorder %s34_s26, %s34_s26 }
  0x10   :  { %p1904_p5 = scmp.ne.s32.totalorder %s34_s26, %s1903_s27  ;;  %p1909_p7 = scmp.lt.s32.totalorder %s1903_s27, %s1903_s27 }
  0x12   :  { %p1910_p8 = por %p1909_p7, %p1908_p6 }
  0x14   :  { %p1911_p9 = pnand %p1910_p8, %p1904_p5 }
  0x16   :  { %1914 = shalt.err (!%p1911_p9)
}
  0x17   :  { %39 = dma.hbm_to_vmem [thread:$0]  %s2269_s3, 512, %s34_s26, [#allocation5], %s1920_s21, %s1920_s21, %s1921_s22  }
  0x18   :  { %1915 = dma.done.wait [#allocation3], 1536  }
  0x19   :  { %1916 = vsyncadd [#allocation3], 4294965760 }
  0x1a   :  { %1917 = dma.done.wait [#allocation5], 512  }
  0x1b   :  { %1918 = vsyncadd [#allocation5], 4294966784  ;;  %v1923_v0 = vmov 0   ;;  %v1924_v1 = vmov 0.0   ;;  %v74_v2 = vld [vmem:[%s2266_s0] sm:$0xff]  ;;  %vm107_vm0 = vcmask 1041408   ;;  %v75_v27 = vlaneseq }
  0x1c   :  { %1848 = vset.pattern.permute.xlu0 %v1923_v0  ;;  %1651 = vmatprep.subr.bf16.mxu0 %v1924_v1  ;;  %v95_v3 = vld [vmem:[%s2267_s1 + $0x60] sm:$0xf]  ;;  %vm1925_vm1 = vmmov 0   ;;  %v93_v5 = vld [vmem:[%s2267_s1 + $0x50] sm:$0xff]  ;;  %v94_v6 = vld [vmem:[%s2267_s1 + $0x58] sm:$0xff]  ;;  %vm178_vm2 = vcmask 261120  }
  0x1d   :  { %1669 = vmatprep.subr.bf16.mxu1 %v1924_v1  ;;  %1665 = vmatprep.mubr.msk.bf16.mxu0 %vm1925_vm1, %v1924_v1  ;;  %v102_v4 = vpack.c.bf16 %v95_v3, %v95_v3  ;;  %v101_v8 = vpack.c.bf16 %v94_v6, %v93_v5  ;;  %v152_v9 = vld [vmem:[#allocation2] sm:$0xff]  ;;  %v92_v11 = vld [vmem:[%s2267_s1 + $0x48] sm:$0xff]  ;;  %v89_v15 = vld [vmem:[%s2267_s1 + $0x30] sm:$0xff]  ;;  %v76_v29 = vand.u32 127, %v75_v27  ;;  %vm103_vm4 = vcmask 818176  }
  0x1e   :  { %1671 = vmatprep.mubr.msk.bf16.mxu1 %vm1925_vm1, %v1924_v1  ;;  %78 = vperm.xlu0 %1848, %v74_v2   ;;  %v91_v10 = vld [vmem:[%s2267_s1 + $0x40] sm:$0xff]  ;;  %v156_v12 = vpack.c.bf16 %v152_v9, %v152_v9  ;;  %v90_v16 = vld [vmem:[%s2267_s1 + $0x38] sm:$0xff]  ;;  %v88_v19 = vld [vmem:[%s2267_s1 + $0x28] sm:$0xff]  ;;  %vm706_vm5 = vcmask 64512   ;;  %vm950_vm6 = vcmask 1043456   ;;  %vm1422_vm7 = vcmask 523264  }
  0x1f   :  { %v109_v7 = vsel %vm107_vm0, %v102_v4, 0  ;;  %v100_v14 = vpack.c.bf16 %v92_v11, %v91_v10  ;;  %v99_v17 = vpack.c.bf16 %v90_v16, %v89_v15  ;;  %v87_v18 = vld [vmem:[%s2267_s1 + $0x20] sm:$0xff]  ;;  %v85_v21 = vld [vmem:[%s2267_s1 + $0x10] sm:$0xff]  ;;  %v86_v22 = vld [vmem:[%s2267_s1 + $0x18] sm:$0xff]  ;;  %vm1537_vm8 = vcmask 1040384  }
  0x20   :  { %1652 = vmatpush3.bf16.msra.mxu0 %v109_v7  ;;  %v183_v13 = vsel %vm178_vm2, %v156_v12, 0  ;;  %v98_v20 = vpack.c.bf16 %v88_v19, %v87_v18  ;;  %v97_v23 = vpack.c.bf16 %v86_v22, %v85_v21  ;;  %v83_v24 = vld [vmem:[%s2267_s1] sm:$0xff]  ;;  %v84_v25 = vld [vmem:[%s2267_s1 + $0x8] sm:$0xff]  ;;  %v163_v36 = vld [vmem:[#allocation2 + $0x30] sm:$0xff] }
  0x21   :  { %1653 = vmatprep.subr.bf16.mxu0 %v1924_v1  ;;  %1670 = vmatpush3.bf16.xpose.msra.mxu1 %v183_v13  ;;  %v96_v26 = vpack.c.bf16 %v84_v25, %v83_v24  ;;  %v161_v28 = vld [vmem:[#allocation2 + $0x20] sm:$0xff]  ;;  %v153_v35 = vld [vmem:[#allocation2 + $0x8] sm:$0xff]  ;;  %v167_v38 = vpack.c.bf16 %v163_v36, %v163_v36  ;;  %v154_v44 = vld [vmem:[#allocation2 + $0x10] sm:$0xff] }
  0x22   :  { %1675 = vmatprep.subr.bf16.mxu1 %v1924_v1  ;;  %v165_v30 = vpack.c.bf16 %v161_v28, %v161_v28  ;;  %v157_v37 = vpack.c.bf16 %v153_v35, %v153_v35  ;;  %v170_v45 = vld [vmem:[#allocation2 + $0x40] sm:$0xff]  ;;  %v158_v47 = vpack.c.bf16 %v154_v44, %v154_v44  ;;  %v155_v52 = vld [vmem:[#allocation2 + $0x18] sm:$0xff]  ;;  %v172_v53 = vld [vmem:[#allocation2 + $0x50] sm:$0xff] }
  0x23   :  { %v441_v42 = vsel %vm178_vm2, %v167_v38, 0  ;;  %v174_v48 = vpack.c.bf16 %v170_v45, %v170_v45  ;;  %v159_v54 = vpack.c.bf16 %v155_v52, %v155_v52  ;;  %v176_v55 = vpack.c.bf16 %v172_v53, %v172_v53  ;;  %v162_v58 = vld [vmem:[#allocation2 + $0x28] sm:$0xff]  ;;  %v164_v61 = vld [vmem:[#allocation2 + $0x38] sm:$0xff] }
  0x24   :  { %1654 = vmatpush3.bf16.msra.mxu0 %v101_v8  ;;  %v355_v34 = vsel %vm178_vm2, %v165_v30, 0  ;;  %v226_v41 = vsel %vm178_vm2, %v157_v37, 0  ;;  %v269_v50 = vsel %vm178_vm2, %v158_v47, 0  ;;  %v166_v59 = vpack.c.bf16 %v162_v58, %v162_v58  ;;  %v171_v0 = vld [vmem:[#allocation2 + $0x48] sm:$0xff]  ;;  %v173_v4 = vld [vmem:[#allocation2 + $0x58] sm:$0xff] }
  0x25   :  { %1655 = vmatprep.subr.bf16.mxu0 %v1924_v1  ;;  %v527_v51 = vsel %vm178_vm2, %v174_v48, 0  ;;  %v312_v56 = vsel %vm178_vm2, %v159_v54, 0  ;;  %v613_v57 = vsel %vm178_vm2, %v176_v55, 0  ;;  %v168_v62 = vpack.c.bf16 %v164_v61, %v164_v61 }
  0x26   :  { %v398_v60 = vsel %vm178_vm2, %v166_v59, 0  ;;  %v175_v2 = vpack.c.bf16 %v171_v0, %v171_v0  ;;  %v177_v5 = vpack.c.bf16 %v173_v4, %v173_v4 }
  0x27   :  { %v484_v63 = vsel %vm178_vm2, %v168_v62, 0 }
  0x28   :  { %1656 = vmatpush3.bf16.msra.mxu0 %v100_v14  ;;  %v570_v3 = vsel %vm178_vm2, %v175_v2, 0  ;;  %v656_v6 = vsel %vm178_vm2, %v177_v5, 0 }
  0x29   :  { %1657 = vmatprep.subr.bf16.mxu0 %v1924_v1 }
  0x2c   :  { %1658 = vmatpush3.bf16.msra.mxu0 %v99_v17 }
  0x2d   :  { %1659 = vmatprep.subr.bf16.mxu0 %v1924_v1 }
  0x30   :  { %1660 = vmatpush3.bf16.msra.mxu0 %v98_v20 }
  0x31   :  { %1661 = vmatprep.subr.bf16.mxu0 %v1924_v1 }
  0x34   :  { %1662 = vmatpush3.bf16.msra.mxu0 %v97_v23 }
  0x35   :  { %1663 = vmatprep.subr.bf16.mxu0 %v1924_v1 }
  0x38   :  { %1664 = vmatpush3.bf16.msra.mxu0 %v96_v26 }
  0x39   :  { %1693 = vmatprep.subr.bf16.mxu0 %v1924_v1 }
  0x99   :  { %v79_v31 = vpop.permute.xlu0 %78 }
  0x9a   :  { %vm80_vm3 = vcmp.eq.s32.totalorder %v76_v29, %v79_v31 }
  0x9b   :  { %v81_v32 = vsel %vm80_vm3, 1.0, %v1924_v1 }
  0x9c   :  { %v82_v33 = vpack.c.bf16 %v81_v32, %v81_v32 }
  0x9e   :  { %1666 = vmatmul.mubr.msk.bf16.vlgmr.msra.gmra.mxu0 %vm103_vm4, %v82_v33 }
  0x9f   :  { %1694 = vmatpush3.bf16.xpose.msra.mxu0 %v355_v34  ;;  %1695 = vmatprep.mubr.msk.bf16.mxu0 %vm1925_vm1, %v1924_v1 }
  0xa0   :  { %1705 = vmatprep.subr.bf16.mxu0 %v1924_v1 }
 0x15e   :  { %v2025_v39 = vpop.f32.mrf.mxu0 }
 0x15f   :  { %v2029_v40 = vpack.c.bf16 %v2025_v39, %v2025_v39 }
 0x160   :  { %v1667_v43 = vpop.f32.mrf.mxu0 }
 0x161   :  { %1672 = vmatmul.mubr.msk.bf16.vlgmr.msra.gmra.mxu1 %vm178_vm2, %v2029_v40  ;;  %1696 = vmatmul.mubr.msk.bf16.vlgmr.msra.gmra.mxu0 %vm178_vm2, %v2029_v40 }
 0x162   :  { %v148_v46 = vpop.f32.mrf.mxu0  ;;  %1676 = vmatpush3.bf16.xpose.msra.mxu1 %v226_v41  ;;  %1706 = vmatpush3.bf16.xpose.msra.mxu0 %v441_v42 }
 0x163   :  { %1677 = vmatprep.mubr.msk.bf16.mxu1 %vm1925_vm1, %v1924_v1  ;;  %1707 = vmatprep.mubr.msk.bf16.mxu0 %vm1925_vm1, %v1924_v1 }
 0x164   :  { %v1668_v49 = vpop.f32.mrf.mxu0  ;;  %1681 = vmatprep.subr.bf16.mxu1 %v1924_v1  ;;  %1717 = vmatprep.subr.bf16.mxu0 %v1924_v1 }
 0x169   :  { %1678 = vmatmul.mubr.msk.bf16.vlgmr.msra.gmra.mxu1 %vm178_vm2, %v2029_v40  ;;  %1708 = vmatmul.mubr.msk.bf16.vlgmr.msra.gmra.mxu0 %vm178_vm2, %v2029_v40 }
 0x16a   :  { %1682 = vmatpush3.bf16.xpose.msra.mxu1 %v269_v50  ;;  %1718 = vmatpush3.bf16.xpose.msra.mxu0 %v527_v51 }
 0x16b   :  { %1683 = vmatprep.mubr.msk.bf16.mxu1 %vm1925_vm1, %v1924_v1  ;;  %1719 = vmatprep.mubr.msk.bf16.mxu0 %vm1925_vm1, %v1924_v1 }
 0x16c   :  { %1687 = vmatprep.subr.bf16.mxu1 %v1924_v1  ;;  %1729 = vmatprep.subr.bf16.mxu0 %v1924_v1 }
 0x171   :  { %1684 = vmatmul.mubr.msk.bf16.vlgmr.msra.gmra.mxu1 %vm178_vm2, %v2029_v40  ;;  %1720 = vmatmul.mubr.msk.bf16.vlgmr.msra.gmra.mxu0 %vm178_vm2, %v2029_v40 }
 0x172   :  { %1688 = vmatpush3.bf16.xpose.msra.mxu1 %v312_v56  ;;  %1730 = vmatpush3.bf16.xpose.msra.mxu0 %v613_v57 }
 0x173   :  { %1689 = vmatprep.mubr.msk.bf16.mxu1 %vm1925_vm1, %v1924_v1  ;;  %1731 = vmatprep.mubr.msk.bf16.mxu0 %vm1925_vm1, %v1924_v1 }
 0x174   :  { %1699 = vmatprep.subr.bf16.mxu1 %v1924_v1  ;;  %1741 = vmatprep.subr.bf16.mxu0 %v1924_v1 }
 0x179   :  { %1690 = vmatmul.mubr.msk.bf16.vlgmr.msra.gmra.mxu1 %vm178_vm2, %v2029_v40  ;;  %1732 = vmatmul.mubr.msk.bf16.vlgmr.msra.gmra.mxu0 %vm178_vm2, %v2029_v40 }
 0x17a   :  { %1700 = vmatpush3.bf16.xpose.msra.mxu1 %v398_v60  ;;  %1701 = vmatprep.mubr.msk.bf16.mxu1 %vm1925_vm1, %v1924_v1 }
 0x17b   :  { %1711 = vmatprep.subr.bf16.mxu1 %v1924_v1  ;;  %1743 = vmatprep.mubr.msk.bf16.mxu0 %vm1925_vm1, %v1924_v1 }
 0x181   :  { %1702 = vmatmul.mubr.msk.bf16.vlgmr.msra.gmra.mxu1 %vm178_vm2, %v2029_v40 }
 0x182   :  { %1712 = vmatpush3.bf16.xpose.msra.mxu1 %v484_v63  ;;  %1713 = vmatprep.mubr.msk.bf16.mxu1 %vm1925_vm1, %v1924_v1 }
 0x183   :  { %1723 = vmatprep.subr.bf16.mxu1 %v1924_v1 }
 0x189   :  { %1714 = vmatmul.mubr.msk.bf16.vlgmr.msra.gmra.mxu1 %vm178_vm2, %v2029_v40 }
 0x18a   :  { %1724 = vmatpush3.bf16.xpose.msra.mxu1 %v570_v3  ;;  %1725 = vmatprep.mubr.msk.bf16.mxu1 %vm1925_vm1, %v1924_v1 }
 0x18b   :  { %1735 = vmatprep.subr.bf16.mxu1 %v1924_v1 }
 0x191   :  { %1726 = vmatmul.mubr.msk.bf16.vlgmr.msra.gmra.mxu1 %vm178_vm2, %v2029_v40 }
 0x192   :  { %1736 = vmatpush3.bf16.xpose.msra.mxu1 %v656_v6  ;;  %1737 = vmatprep.mubr.msk.bf16.mxu1 %vm1925_vm1, %v1924_v1 }
 0x193   :  { %1747 = vmatprep.subr.bf16.mxu1 %v1924_v1 }
 0x199   :  { %1738 = vmatmul.mubr.msk.bf16.vlgmr.msra.gmra.mxu1 %vm178_vm2, %v2029_v40 }
 0x19a   :  { %1749 = vmatprep.mubr.msk.bf16.mxu1 %vm1925_vm1, %v1924_v1 }
 0x221   :  { %v219_v7 = vpop.f32.mrf.mxu1  ;;  %v391_v8 = vpop.f32.mrf.mxu0 }
 0x222   :  { %v702_v9 = vpack.c.bf16 %v391_v8, %v391_v8  ;;  %v698_v19 = vpack.c.bf16 %v219_v7, %v219_v7 }
 0x223   :  { %v1673_v10 = vpop.f32.mrf.mxu1  ;;  %v1697_v11 = vpop.f32.mrf.mxu0 }
 0x224   :  { %v711_v12 = vsel %vm706_vm5, %v702_v9, 0 }
 0x225   :  { %v222_v13 = vpop.f32.mrf.mxu1  ;;  %v394_v14 = vpop.f32.mrf.mxu0  ;;  %1742 = vmatpush3.bf16.xpose.msra.mxu0 %v711_v12 }
 0x226   :  { %1753 = vmatprep.subr.bf16.mxu0 %v1924_v1 }
 0x227   :  { %v1674_v15 = vpop.f32.mrf.mxu1  ;;  %v1698_v16 = vpop.f32.mrf.mxu0 }
 0x229   :  { %v262_v17 = vpop.f32.mrf.mxu1  ;;  %v477_v18 = vpop.f32.mrf.mxu0 }
 0x22a   :  { %v704_v20 = vpack.c.bf16 %v477_v18, %v477_v18  ;;  %v699_v56 = vpack.c.bf16 %v262_v17, %v262_v17 }
 0x22b   :  { %v1679_v21 = vpop.f32.mrf.mxu1  ;;  %v1709_v22 = vpop.f32.mrf.mxu0 }
 0x22c   :  { %v803_v23 = vsel %vm706_vm5, %v704_v20, 0  ;;  %1744 = vmatmul.mubr.msk.bf16.vlgmr.msra.gmra.mxu0 %vm706_vm5, %v698_v19 }
 0x22d   :  { %v265_v24 = vpop.f32.mrf.mxu1  ;;  %v480_v25 = vpop.f32.mrf.mxu0  ;;  %1754 = vmatpush3.bf16.xpose.msra.mxu0 %v803_v23  ;;  %1755 = vmatprep.mubr.msk.bf16.mxu0 %vm1925_vm1, %v1924_v1 }
 0x22e   :  { %1765 = vmatprep.subr.bf16.mxu0 %v1924_v1 }
 0x22f   :  { %v1680_v26 = vpop.f32.mrf.mxu1  ;;  %v1710_v28 = vpop.f32.mrf.mxu0 }
 0x231   :  { %v305_v29 = vpop.f32.mrf.mxu1  ;;  %v563_v30 = vpop.f32.mrf.mxu0 }
 0x232   :  { %v700_v31 = vpack.c.bf16 %v305_v29, %v305_v29  ;;  %v943_v32 = vpack.c.bf16 %v563_v30, %v563_v30 }
 0x233   :  { %v1685_v33 = vpop.f32.mrf.mxu1  ;;  %v1721_v34 = vpop.f32.mrf.mxu0 }
 0x234   :  { %v952_v35 = vsel %vm950_vm6, %v943_v32, 0  ;;  %1756 = vmatmul.mubr.msk.bf16.vlgmr.msra.gmra.mxu0 %vm706_vm5, %v700_v31 }
 0x235   :  { %v308_v36 = vpop.f32.mrf.mxu1  ;;  %v566_v37 = vpop.f32.mrf.mxu0  ;;  %1766 = vmatpush3.bf16.msra.mxu0 %v952_v35  ;;  %1767 = vmatprep.mubr.msk.bf16.mxu0 %vm1925_vm1, %v1924_v1 }
 0x236   :  { %1777 = vmatprep.subr.bf16.mxu0 %v1924_v1 }
 0x237   :  { %v1686_v38 = vpop.f32.mrf.mxu1  ;;  %v1722_v40 = vpop.f32.mrf.mxu0 }
 0x239   :  { %v348_v41 = vpop.f32.mrf.mxu1  ;;  %v2111_v42 = vpop.f32.mrf.mxu0 }
 0x23a   :  { %v701_v63 = vpack.c.bf16 %v348_v41, %v348_v41 }
 0x23b   :  { %v1691_v43 = vpop.f32.mrf.mxu1  ;;  %v1733_v44 = vpop.f32.mrf.mxu0 }
 0x23d   :  { %v351_v45 = vpop.f32.mrf.mxu1  ;;  %v652_v46 = vpop.f32.mrf.mxu0 }
 0x23f   :  { %v1692_v47 = vpop.f32.mrf.mxu1  ;;  %v1734_v48 = vpop.f32.mrf.mxu0 }
 0x241   :  { %v434_v49 = vpop.f32.mrf.mxu1 }
 0x242   :  { %v703_v50 = vpack.c.bf16 %v434_v49, %v434_v49 }
 0x243   :  { %v1703_v51 = vpop.f32.mrf.mxu1 }
 0x244   :  { %v757_v52 = vsel %vm706_vm5, %v703_v50, 0 }
 0x245   :  { %v437_v53 = vpop.f32.mrf.mxu1  ;;  %1748 = vmatpush3.bf16.xpose.msra.mxu1 %v757_v52 }
 0x246   :  { %1759 = vmatprep.subr.bf16.mxu1 %v1924_v1 }
 0x247   :  { %v1704_v54 = vpop.f32.mrf.mxu1 }
 0x249   :  { %v520_v55 = vpop.f32.mrf.mxu1 }
 0x24a   :  { %v705_v57 = vpack.c.bf16 %v520_v55, %v520_v55 }
 0x24b   :  { %v1715_v58 = vpop.f32.mrf.mxu1 }
 0x24c   :  { %v849_v59 = vsel %vm706_vm5, %v705_v57, 0  ;;  %1750 = vmatmul.mubr.msk.bf16.vlgmr.msra.gmra.mxu1 %vm706_vm5, %v699_v56 }
 0x24d   :  { %v523_v60 = vpop.f32.mrf.mxu1  ;;  %1760 = vmatpush3.bf16.xpose.msra.mxu1 %v849_v59  ;;  %1761 = vmatprep.mubr.msk.bf16.mxu1 %vm1925_vm1, %v1924_v1  ;;  %v945_v59 = vpack.c.bf16 %v2111_v42, %v2111_v42 }
 0x24e   :  { %1771 = vmatprep.subr.bf16.mxu1 %v1924_v1 }
 0x24f   :  { %v1716_v61 = vpop.f32.mrf.mxu1 }
 0x251   :  { %v606_v62 = vpop.f32.mrf.mxu1 }
 0x252   :  { %v944_v0 = vpack.c.bf16 %v606_v62, %v606_v62  ;;  %v1044_v62 = vsel %vm950_vm6, %v945_v59, 0 }
 0x253   :  { %v1727_v2 = vpop.f32.mrf.mxu1 }
 0x254   :  { %v998_v3 = vsel %vm950_vm6, %v944_v0, 0  ;;  %1762 = vmatmul.mubr.msk.bf16.vlgmr.msra.gmra.mxu1 %vm706_vm5, %v701_v63 }
 0x255   :  { %v609_v4 = vpop.f32.mrf.mxu1  ;;  %1772 = vmatpush3.bf16.msra.mxu1 %v998_v3  ;;  %1773 = vmatprep.mubr.msk.bf16.mxu1 %vm1925_vm1, %v1924_v1 }
 0x256   :  { %1783 = vmatprep.subr.bf16.mxu1 %v1924_v1 }
 0x257   :  { %v1728_v5 = vpop.f32.mrf.mxu1 }
 0x259   :  { %v2125_v6 = vpop.f32.mrf.mxu1 }
 0x25a   :  { %v946_v42 = vpack.c.bf16 %v2125_v6, %v2125_v6 }
 0x25b   :  { %v1739_v7 = vpop.f32.mrf.mxu1 }
 0x25d   :  { %v695_v8 = vpop.f32.mrf.mxu1 }
 0x25e   :  { %v1090_v8 = vsel %vm950_vm6, %v946_v42, 0 }
 0x25f   :  { %v1740_v9 = vpop.f32.mrf.mxu1 }
 0x2ec   :  { %v747_v10 = vpop.f32.mrf.mxu0 }
 0x2ed   :  { %v891_v11 = vmul.f32 0.35355338, %v747_v10 }
 0x2ee   :  { %v1745_v12 = vpop.f32.mrf.mxu0 }
 0x2ef   :  { %v895_v13 = vsel %vm706_vm5, %v891_v11, -inf }
 0x2f0   :  { %896 = vmax.xlane.f32.xlu0 %v895_v13  ;;  %v750_v14 = vpop.f32.mrf.mxu0  ;;  %v1136_v13 = vld [vmem:[#allocation4] sm:$0xff] }
 0x2f1   :  { %v1140_v14 = vpack.c.bf16 %v1136_v13, %v1136_v13 }
 0x2f2   :  { %v1746_v15 = vpop.f32.mrf.mxu0 }
 0x2f3   :  { %v1148_v15 = vsel %vm950_vm6, %v1140_v14, 0  ;;  %v51_v14 = vld [vmem:[%s2270_s4 + $0x10] sm:$0xff] }
 0x2f4   :  { %v839_v16 = vpop.f32.mrf.mxu0 }
 0x2f5   :  { %v893_v23 = vmul.f32 0.35355338, %v839_v16  ;;  %v1137_v16 = vld [vmem:[#allocation4 + $0x8] sm:$0xff] }
 0x2f6   :  { %v1757_v17 = vpop.f32.mrf.mxu0 }
 0x2f7   :  { %v901_v28 = vsel %vm706_vm5, %v893_v23, -inf  ;;  %v1141_v17 = vpack.c.bf16 %v1137_v16, %v1137_v16  ;;  %v49_v16 = vld [vmem:[%s2270_s4] sm:$0xff] }
 0x2f8   :  { %v842_v18 = vpop.f32.mrf.mxu0 }
 0x2f9   :  { %v1194_v18 = vsel %vm950_vm6, %v1141_v17, 0  ;;  %v50_v17 = vld [vmem:[%s2270_s4 + $0x8] sm:$0xff] }
 0x2fa   :  { %v1758_v19 = vpop.f32.mrf.mxu0 }
 0x2fb   :  { %v1138_v19 = vld [vmem:[#allocation4 + $0x10] sm:$0xff] }
 0x30c   :  { %v793_v20 = vpop.f32.mrf.mxu1 }
 0x30d   :  { %v892_v21 = vmul.f32 0.35355338, %v793_v20  ;;  %v1142_v20 = vpack.c.bf16 %v1138_v19, %v1138_v19 }
 0x30e   :  { %v1751_v22 = vpop.f32.mrf.mxu1 }
 0x30f   :  { %v898_v24 = vsel %vm706_vm5, %v892_v21, -inf }
 0x310   :  { %899 = vmax.xlane.f32.xlu1 %v898_v24  ;;  %v796_v25 = vpop.f32.mrf.mxu1 }
 0x312   :  { %v1752_v26 = vpop.f32.mrf.mxu1 }
 0x314   :  { %v885_v29 = vpop.f32.mrf.mxu1  ;;  %902 = vmax.xlane.f32.xlu1 %v901_v28  ;;  %v1139_v28 = vld [vmem:[#allocation4 + $0x18] sm:$0xff] }
 0x315   :  { %v894_v30 = vmul.f32 0.35355338, %v885_v29  ;;  %v1143_v29 = vpack.c.bf16 %v1139_v28, %v1139_v28 }
 0x316   :  { %v1763_v31 = vpop.f32.mrf.mxu1 }
 0x317   :  { %v904_v32 = vsel %vm706_vm5, %v894_v30, -inf }
 0x318   :  { %v888_v33 = vpop.f32.mrf.mxu1  ;;  %905 = vmax.xlane.f32.xlu1 %v904_v32  ;;  %v1286_v32 = vsel %vm950_vm6, %v1143_v29, 0 }
 0x31a   :  { %v1764_v34 = vpop.f32.mrf.mxu1 }
 0x379   :  { %v897_v35 = vpop.xlane.xlu0 %896 }
 0x37a   :  { %v907_v36 = vsub.f32 %v891_v11, %v897_v35 }
 0x37c   :  { %v911_v37 = vmul.f32 1.442695, %v907_v36 }
 0x37e   :  { %1849 = vpow2.f32 %v911_v37 }
 0x38b   :  { %v1850_v38 = vpop.eup %1849 }
 0x38c   :  { %v919_v40 = vsel %vm706_vm5, %v1850_v38, 0.0 }
 0x38d   :  { %920 = vadd.xlane.f32.xlu1 %v919_v40 }
 0x399   :  { %v900_v41 = vpop.xlane.xlu1 %899 }
 0x39a   :  { %v908_v43 = vsub.f32 %v892_v21, %v900_v41 }
 0x39c   :  { %v913_v44 = vmul.f32 1.442695, %v908_v43 }
 0x39d   :  { %v903_v45 = vpop.xlane.xlu1 %902 }
 0x39e   :  { %1851 = vpow2.f32 %v913_v44  ;;  %v909_v46 = vsub.f32 %v893_v23, %v903_v45  ;;  %v1240_v23 = vsel %vm950_vm6, %v1142_v20, 0 }
 0x3a0   :  { %v915_v47 = vmul.f32 1.442695, %v909_v46 }
 0x3a1   :  { %v906_v48 = vpop.xlane.xlu1 %905 }
 0x3a2   :  { %1853 = vpow2.f32 %v915_v47  ;;  %v910_v49 = vsub.f32 %v894_v30, %v906_v48 }
 0x3a4   :  { %v917_v50 = vmul.f32 1.442695, %v910_v49 }
 0x3a6   :  { %1855 = vpow2.f32 %v917_v50 }
 0x3ab   :  { %v1852_v51 = vpop.eup %1851 }
 0x3ac   :  { %v922_v52 = vsel %vm706_vm5, %v1852_v51, 0.0 }
 0x3ad   :  { %923 = vadd.xlane.f32.xlu1 %v922_v52 }
 0x3af   :  { %v1854_v53 = vpop.eup %1853 }
 0x3b0   :  { %v925_v54 = vsel %vm706_vm5, %v1854_v53, 0.0 }
 0x3b1   :  { %926 = vadd.xlane.f32.xlu1 %v925_v54 }
 0x3b3   :  { %v1856_v55 = vpop.eup %1855 }
 0x3b4   :  { %v928_v56 = vsel %vm706_vm5, %v1856_v55, 0.0 }
 0x3b5   :  { %929 = vadd.xlane.f32.xlu1 %v928_v56 }
 0x416   :  { %v921_v57 = vpop.xlane.xlu1 %920 }
 0x417   :  { %1857 = vrcp.f32 %v921_v57 }
 0x424   :  { %v1858_v58 = vpop.eup %1857 }
 0x425   :  { %v935_v60 = vmul.f32 %v1858_v58, %v1850_v38 }
 0x427   :  { %v939_v61 = vpack.c.bf16 %v935_v60, %v935_v60 }
 0x429   :  { %1768 = vmatmul.mubr.msk.bf16.vlgmr.msra.gmra.mxu0 %vm706_vm5, %v939_v61 }
 0x42a   :  { %1778 = vmatpush3.bf16.msra.mxu0 %v1044_v62  ;;  %1779 = vmatprep.mubr.msk.bf16.mxu0 %vm1925_vm1, %v1924_v1 }
 0x42b   :  { %1789 = vmatprep.subr.bf16.mxu0 %v1924_v1 }
 0x436   :  { %v924_v63 = vpop.xlane.xlu1 %923 }
 0x437   :  { %1859 = vrcp.f32 %v924_v63 }
 0x43a   :  { %v927_v0 = vpop.xlane.xlu1 %926 }
 0x43b   :  { %1861 = vrcp.f32 %v927_v0 }
 0x43e   :  { %v930_v2 = vpop.xlane.xlu1 %929 }
 0x43f   :  { %1863 = vrcp.f32 %v930_v2 }
 0x444   :  { %v1860_v3 = vpop.eup %1859 }
 0x445   :  { %v936_v4 = vmul.f32 %v1860_v3, %v1852_v51 }
 0x447   :  { %v940_v5 = vpack.c.bf16 %v936_v4, %v936_v4 }
 0x448   :  { %v1862_v7 = vpop.eup %1861 }
 0x449   :  { %1774 = vmatmul.mubr.msk.bf16.vlgmr.msra.gmra.mxu1 %vm706_vm5, %v940_v5  ;;  %v937_v9 = vmul.f32 %v1862_v7, %v1854_v53 }
 0x44a   :  { %1784 = vmatpush3.bf16.msra.mxu1 %v1090_v8  ;;  %1785 = vmatprep.mubr.msk.bf16.mxu1 %vm1925_vm1, %v1924_v1 }
 0x44b   :  { %v941_v10 = vpack.c.bf16 %v937_v9, %v937_v9  ;;  %1795 = vmatprep.subr.bf16.mxu1 %v1924_v1 }
 0x44c   :  { %v1864_v11 = vpop.eup %1863 }
 0x44d   :  { %1780 = vmatmul.mubr.msk.bf16.vlgmr.msra.gmra.mxu0 %vm706_vm5, %v941_v10  ;;  %v938_v12 = vmul.f32 %v1864_v11, %v1856_v55 }
 0x44e   :  { %1791 = vmatprep.mubr.msk.bf16.mxu0 %vm1925_vm1, %v1924_v1  ;;  %1790 = vmatpush3.bf16.msra.mxu0 %v1148_v15  ;;  %v52_v15 = vld [vmem:[%s2270_s4 + $0x18] sm:$0xff] }
 0x44f   :  { %v942_v6 = vpack.c.bf16 %v938_v12, %v938_v12  ;;  %1801 = vmatprep.subr.bf16.mxu0 %v1924_v1 }
 0x451   :  { %1786 = vmatmul.mubr.msk.bf16.vlgmr.msra.gmra.mxu1 %vm706_vm5, %v942_v6 }
 0x452   :  { %1797 = vmatprep.mubr.msk.bf16.mxu1 %vm1925_vm1, %v1924_v1  ;;  %1796 = vmatpush3.bf16.msra.mxu1 %v1194_v18  ;;  %v66_v18 = vpack.c.bf16 %v50_v17, %v49_v16  ;;  %v61_v16 = vld [vmem:[%s2270_s4 + $0x60] sm:$0xff]  ;;  %v62_v17 = vld [vmem:[%s2270_s4 + $0x68] sm:$0xff] }
 0x453   :  { %1807 = vmatprep.subr.bf16.mxu1 %v1924_v1 }
 0x4e9   :  { %v988_v21 = vpop.f32.mrf.mxu0 }
 0x4ea   :  { %v1132_v22 = vpack.c.bf16 %v988_v21, %v988_v21 }
 0x4eb   :  { %v1769_v24 = vpop.f32.mrf.mxu0 }
 0x4ec   :  { %1792 = vmatmul.mubr.msk.bf16.vlgmr.msra.gmra.mxu0 %vm706_vm5, %v1132_v22  ;;  %v2197_v22 = vshrl.u32 %v75_v27, 7  ;;  %v2203_v24 = vld [vmem:[%s2270_s4 + $0x80] sm:$0xff]  ;;  %v59_v27 = vld [vmem:[%s2270_s4 + $0x50] sm:$0xff] }
 0x4ed   :  { %v991_v25 = vpop.f32.mrf.mxu0  ;;  %1802 = vmatpush3.bf16.msra.mxu0 %v1240_v23  ;;  %1803 = vmatprep.mubr.msk.bf16.mxu0 %vm1925_vm1, %v1924_v1 }
 0x4ee   :  { %1813 = vmatprep.subr.bf16.mxu0 %v1924_v1  ;;  %v1352_v23 = vsub.s32 0, %v2197_v22  ;;  %v1357_v25 = vsub.s32 1, %v2197_v22 }
 0x4ef   :  { %v1770_v26 = vpop.f32.mrf.mxu0 }
 0x4f0   :  { %v1353_v26 = vrot.slane %v2203_v24, %v1352_v23  ;;  %v1482_v23 = vsub.s32 4, %v2197_v22 }
 0x509   :  { %v1034_v30 = vpop.f32.mrf.mxu1 }
 0x50a   :  { %v1133_v31 = vpack.c.bf16 %v1034_v30, %v1034_v30  ;;  %v1358_v30 = vrot.slane %v2203_v24, %v1357_v25  ;;  %v1487_v25 = vsub.s32 5, %v2197_v22 }
 0x50b   :  { %v1775_v33 = vpop.f32.mrf.mxu1 }
 0x50c   :  { %1798 = vmatmul.mubr.msk.bf16.vlgmr.msra.gmra.mxu1 %vm706_vm5, %v1133_v31 }
 0x50d   :  { %v1037_v34 = vpop.f32.mrf.mxu1  ;;  %v1080_v35 = vpop.f32.mrf.mxu0  ;;  %1808 = vmatpush3.bf16.msra.mxu1 %v1286_v32  ;;  %1809 = vmatprep.mubr.msk.bf16.mxu1 %vm1925_vm1, %v1924_v1 }
 0x50e   :  { %v1134_v36 = vpack.c.bf16 %v1080_v35, %v1080_v35  ;;  %1821 = vmatprep.subr.bf16.mxu1 %v1924_v1  ;;  %v60_v34 = vld [vmem:[%s2270_s4 + $0x58] sm:$0xff]  ;;  %v57_v35 = vld [vmem:[%s2270_s4 + $0x40] sm:$0xff] }
 0x50f   :  { %v1776_v37 = vpop.f32.mrf.mxu1  ;;  %v1781_v38 = vpop.f32.mrf.mxu0 }
 0x510   :  { %1804 = vmatmul.mubr.msk.bf16.vlgmr.msra.gmra.mxu0 %vm706_vm5, %v1134_v36  ;;  %v71_v36 = vpack.c.bf16 %v60_v34, %v59_v27  ;;  %v58_v37 = vld [vmem:[%s2270_s4 + $0x48] sm:$0xff] }
 0x511   :  { %v1083_v40 = vpop.f32.mrf.mxu0  ;;  %v1126_v41 = vpop.f32.mrf.mxu1  ;;  %1817 = vmatprep.mubr.msk.bf16.mxu0 %vm1925_vm1, %v1924_v1  ;;  %v70_v38 = vpack.c.bf16 %v58_v37, %v57_v35 }
 0x512   :  { %v1135_v43 = vpack.c.bf16 %v1126_v41, %v1126_v41  ;;  %v55_v40 = vld [vmem:[%s2270_s4 + $0x30] sm:$0xff]  ;;  %v56_v41 = vld [vmem:[%s2270_s4 + $0x38] sm:$0xff] }
 0x513   :  { %v1782_v44 = vpop.f32.mrf.mxu0  ;;  %v1787_v45 = vpop.f32.mrf.mxu1 }
 0x514   :  { %1810 = vmatmul.mubr.msk.bf16.vlgmr.msra.gmra.mxu1 %vm706_vm5, %v1135_v43  ;;  %v69_v43 = vpack.c.bf16 %v56_v41, %v55_v40  ;;  %v53_v44 = vld [vmem:[%s2270_s4 + $0x20] sm:$0xff]  ;;  %v54_v45 = vld [vmem:[%s2270_s4 + $0x28] sm:$0xff] }
 0x515   :  { %v1129_v46 = vpop.f32.mrf.mxu1  ;;  %1829 = vmatprep.mubr.msk.bf16.mxu1 %vm1925_vm1, %v1924_v1  ;;  %1822 = vmatpush3.bf16.msra.mxu1 %v71_v36 }
 0x516   :  { %1823 = vmatprep.subr.bf16.mxu1 %v1924_v1  ;;  %v68_v46 = vpack.c.bf16 %v54_v45, %v53_v44 }
 0x517   :  { %v1788_v47 = vpop.f32.mrf.mxu1 }
 0x518   :  { %v1363_v47 = vsub.s32 2, %v2197_v22 }
 0x519   :  { %1824 = vmatpush3.bf16.msra.mxu1 %v70_v38 }
 0x51a   :  { %1825 = vmatprep.subr.bf16.mxu1 %v1924_v1 }
 0x51d   :  { %1826 = vmatpush3.bf16.msra.mxu1 %v69_v43 }
 0x51e   :  { %1827 = vmatprep.subr.bf16.mxu1 %v1924_v1 }
 0x521   :  { %1828 = vmatpush3.bf16.msra.mxu1 %v68_v46 }
 0x5ac   :  { %v1184_v48 = vpop.f32.mrf.mxu0 }
 0x5ad   :  { %v1328_v57 = vsel %vm178_vm2, %v1184_v48, 0.0  ;;  %v1364_v48 = vrot.slane %v2203_v24, %v1363_v47 }
 0x5ae   :  { %v1793_v49 = vpop.f32.mrf.mxu0 }
 0x5b0   :  { %v1187_v50 = vpop.f32.mrf.mxu0 }
 0x5b2   :  { %v1794_v51 = vpop.f32.mrf.mxu0 }
 0x5cc   :  { %v1230_v52 = vpop.f32.mrf.mxu1 }
 0x5cd   :  { %v1329_v54 = vsel %vm178_vm2, %v1230_v52, 0.0 }
 0x5ce   :  { %v1799_v53 = vpop.f32.mrf.mxu1  ;;  %v1330_v59 = vadd.f32 %v1329_v54, %v1328_v57 }
 0x5d0   :  { %v1233_v55 = vpop.f32.mrf.mxu1  ;;  %v1276_v56 = vpop.f32.mrf.mxu0 }
 0x5d1   :  { %v1331_v58 = vsel %vm178_vm2, %v1276_v56, 0.0 }
 0x5d2   :  { %v1800_v60 = vpop.f32.mrf.mxu1  ;;  %v1805_v61 = vpop.f32.mrf.mxu0  ;;  %v1332_v62 = vadd.f32 %v1331_v58, %v1330_v59 }
 0x5d4   :  { %v1279_v63 = vpop.f32.mrf.mxu0  ;;  %v1322_v0 = vpop.f32.mrf.mxu1 }
 0x5d5   :  { %v1333_v2 = vsel %vm178_vm2, %v1322_v0, 0.0  ;;  %v1420_v0 = vsub.s32 3, %v2197_v22 }
 0x5d6   :  { %v1334_v3 = vadd.f32 %v1333_v2, %v1332_v62  ;;  %v1806_v42 = vpop.f32.mrf.mxu0  ;;  %v1811_v4 = vpop.f32.mrf.mxu1 }
 0x5d7   :  { %v1421_v2 = vrot.slane %v2203_v24, %v1420_v0 }
 0x5d8   :  { %v1325_v5 = vpop.f32.mrf.mxu1  ;;  %v1335_v7 = vadd.f32 %v1334_v3, %v2025_v39  ;;  %v67_v39 = vpack.c.bf16 %v52_v15, %v51_v14  ;;  %v63_v14 = vld [vmem:[%s2270_s4 + $0x70] sm:$0xff]  ;;  %v64_v15 = vld [vmem:[%s2270_s4 + $0x78] sm:$0xff] }
 0x5da   :  { %v1812_v8 = vpop.f32.mrf.mxu1  ;;  %v1336_v9 = vsel %vm178_vm2, %v1335_v7, 0.0  ;;  %1814 = vmatpush3.bf16.msra.mxu0 %v67_v39  ;;  %v73_v39 = vpack.c.bf16 %v64_v15, %v63_v14 }
 0x5db   :  { %1337 = vadd.xlane.f32.xlu1 %v1336_v9  ;;  %1815 = vmatprep.subr.bf16.mxu0 %v1924_v1 }
 0x5de   :  { %1816 = vmatpush3.bf16.msra.mxu0 %v66_v18  ;;  %v72_v18 = vpack.c.bf16 %v62_v17, %v61_v16 }
 0x5df   :  { %1833 = vmatprep.subr.bf16.mxu0 %v1924_v1 }
 0x664   :  { %v1338_v10 = vpop.xlane.xlu1 %1337 }
 0x665   :  { %v1340_v11 = vmul.f32 0.03125, %v1338_v10 }
 0x667   :  { %v1341_v12 = vsub.f32 %v1335_v7, %v1340_v11 }
 0x669   :  { %v1342_v6 = vmul.f32 %v1341_v12, %v1341_v12 }
 0x66b   :  { %v1343_v13 = vsel %vm178_vm2, %v1342_v6, 0.0 }
 0x66c   :  { %1344 = vadd.xlane.f32.xlu1 %v1343_v13 }
 0x6f5   :  { %v1345_v19 = vpop.xlane.xlu1 %1344 }
 0x6f6   :  { %v1346_v20 = vmul.f32 0.03125, %v1345_v19 }
 0x6f8   :  { %v1347_v21 = vadd.f32 1e-05, %v1346_v20 }
 0x6fa   :  { %1865 = vrsqrt.f32 %v1347_v21 }
 0x707   :  { %v1866_v28 = vpop.eup %1865 }
 0x708   :  { %v1349_v29 = vmul.f32 %v1866_v28, %v1341_v12 }
 0x70a   :  { %v1354_v31 = vmul.f32 %v1353_v26, %v1349_v29  ;;  %v1483_v26 = vrot.slane %v2203_v24, %v1482_v23 }
 0x70c   :  { %v1359_v32 = vadd.f32 %v1358_v30, %v1354_v31  ;;  %v1488_v30 = vrot.slane %v2203_v24, %v1487_v25 }
 0x70e   :  { %v1360_v33 = vpack.c.bf16 %v1359_v32, %v1359_v32 }
 0x710   :  { %1818 = vmatmul.mubr.msk.bf16.vlgmr.msra.gmra.mxu0 %vm178_vm2, %v1360_v33 }
 0x711   :  { %1837 = vmatprep.mubr.msk.bf16.mxu0 %vm1925_vm1, %v1924_v1  ;;  %1834 = vmatpush3.bf16.msra.mxu0 %v73_v39 }
 0x712   :  { %1835 = vmatprep.subr.bf16.mxu0 %v1924_v1  ;;  %v1492_v1 = vrot.slane %v2203_v24, 6 }
 0x715   :  { %1836 = vmatpush3.bf16.msra.mxu0 %v72_v18 }
 0x7d0   :  { %v1402_v49 = vpop.f32.mrf.mxu0 }
 0x7d1   :  { %v1403_v50 = vadd.f32 %v1402_v49, %v1364_v48 }
 0x7d2   :  { %v1819_v51 = vpop.f32.mrf.mxu0 }
 0x7d3   :  { %v1409_v52 = vmul.f32 0.044715, %v1403_v50  ;;  %v1408_v60 = vmul.f32 0.5, %v1403_v50 }
 0x7d4   :  { %v1405_v53 = vpop.f32.mrf.mxu0 }
 0x7d5   :  { %v1410_v54 = vmul.f32 %v1409_v52, %v1403_v50 }
 0x7d6   :  { %v1820_v55 = vpop.f32.mrf.mxu0 }
 0x7d7   :  { %v1411_v56 = vmul.f32 %v1410_v54, %v1403_v50 }
 0x7d9   :  { %v1412_v57 = vadd.f32 %v1411_v56, %v1403_v50 }
 0x7db   :  { %v1413_v58 = vmul.f32 0.7978846, %v1412_v57 }
 0x7dd   :  { %1867 = vtanh.f32 %v1413_v58 }
 0x7ea   :  { %v1868_v59 = vpop.eup %1867 }
 0x7eb   :  { %v1415_v61 = vadd.f32 1.0, %v1868_v59 }
 0x7ed   :  { %v1416_v62 = vmul.f32 %v1415_v61, %v1408_v60 }
 0x7ef   :  { %v1417_v63 = vpack.c.bf16 %v1416_v62, %v1416_v62 }
 0x7f1   :  { %1830 = vmatmul.mubr.msk.bf16.vlgmr.msra.gmra.mxu1 %vm1422_vm7, %v1417_v63 }
 0x8b1   :  { %v1460_v3 = vpop.f32.mrf.mxu1 }
 0x8b2   :  { %v1461_v42 = vadd.f32 %v1460_v3, %v1421_v2 }
 0x8b3   :  { %v1831_v4 = vpop.f32.mrf.mxu1 }
 0x8b4   :  { %v1466_v5 = vadd.f32 %v1461_v42, %v1359_v32 }
 0x8b5   :  { %v1463_v7 = vpop.f32.mrf.mxu1 }
 0x8b6   :  { %v1467_v8 = vsel %vm178_vm2, %v1466_v5, 0.0 }
 0x8b7   :  { %1468 = vadd.xlane.f32.xlu0 %v1467_v8  ;;  %v1832_v9 = vpop.f32.mrf.mxu1 }
 0x940   :  { %v1469_v10 = vpop.xlane.xlu0 %1468 }
 0x941   :  { %v1470_v11 = vmul.f32 0.03125, %v1469_v10 }
 0x943   :  { %v1471_v12 = vsub.f32 %v1466_v5, %v1470_v11 }
 0x945   :  { %v1472_v6 = vmul.f32 %v1471_v12, %v1471_v12 }
 0x947   :  { %v1473_v13 = vsel %vm178_vm2, %v1472_v6, 0.0 }
 0x948   :  { %1474 = vadd.xlane.f32.xlu1 %v1473_v13 }
 0x9d1   :  { %v1475_v19 = vpop.xlane.xlu1 %1474 }
 0x9d2   :  { %v1476_v20 = vmul.f32 0.03125, %v1475_v19 }
 0x9d4   :  { %v1477_v21 = vadd.f32 1e-05, %v1476_v20 }
 0x9d6   :  { %1869 = vrsqrt.f32 %v1477_v21 }
 0x9e3   :  { %v1870_v28 = vpop.eup %1869 }
 0x9e4   :  { %v1479_v29 = vmul.f32 %v1870_v28, %v1471_v12 }
 0x9e6   :  { %v1484_v31 = vmul.f32 %v1483_v26, %v1479_v29 }
 0x9e8   :  { %v1489_v32 = vadd.f32 %v1488_v30, %v1484_v31 }
 0x9ea   :  { %v1490_v33 = vpack.c.bf16 %v1489_v32, %v1489_v32 }
 0x9ec   :  { %1838 = vmatmul.mubr.msk.bf16.vlgmr.msra.gmra.mxu0 %vm178_vm2, %v1490_v33 }
 0xaac   :  { %v1531_v27 = vpop.f32.mrf.mxu0 }
 0xaad   :  { %v1532_v34 = vadd.f32 %v1531_v27, %v1492_v1 }
 0xaae   :  { %v1839_v35 = vpop.f32.mrf.mxu0 }
 0xaaf   :  { %v1538_v36 = vsel %vm1537_vm8, %v1532_v34, -inf }
 0xab0   :  { %1539 = vmax.xlane.f32.xlu0 %v1538_v36  ;;  %v1534_v22 = vpop.f32.mrf.mxu0 }
 0xab2   :  { %v1840_v37 = vpop.f32.mrf.mxu0 }
 0xb39   :  { %v1540_v38 = vpop.xlane.xlu0 %1539 }
 0xb3a   :  { %v1541_v40 = vsub.f32 %v1532_v34, %v1540_v38 }
 0xb3c   :  { %v1542_v41 = vmul.f32 1.442695, %v1541_v40 }
 0xb3e   :  { %1871 = vpow2.f32 %v1542_v41 }
 0xb4b   :  { %v1872_v43 = vpop.eup %1871 }
 0xb4c   :  { %v1544_v44 = vsel %vm1537_vm8, %v1872_v43, 0.0 }
 0xb4d   :  { %1545 = vadd.xlane.f32.xlu1 %v1544_v44 }
 0xbd6   :  { %v1546_v45 = vpop.xlane.xlu1 %1545 }
 0xbd7   :  { %1873 = vrcp.f32 %v1546_v45 }
 0xbe4   :  { %v1874_v46 = vpop.eup %1873 }
 0xbe5   :  { %v1548_v47 = vmul.f32 %v1874_v46, %v1872_v43 }
 0xbe7   :  { %1549 = vst [vmem:[%s2271_s5] sm:$0x1] %v1548_v47 }
 0xbe8   :  { %1554 = vsyncpa [#allocation3], 1 }
 0xbe9   :  { %1555 = vsyncpa [#allocation5], 1 }

</bundles_post_ra>
